<compile_context>
chip_gen: v6e
topology: v6e:2x2x1
jax: 0.10.0
libtpu: 0.0.40
codegen_flags: <defaults>
</compile_context>

<pallas_src>
import functools

import jax
import jax.numpy as jnp
import numpy as np
from jax.experimental import pallas as pl
from jax.experimental.pallas import tpu as pltpu

LANE = 128
SUBLANE = 8


def _round_up(x, m):
    return ((x + m - 1) // m) * m


def _pad2d(x, rows, cols):
    r, c = x.shape
    return jnp.pad(x, ((0, rows - r), (0, cols - c)))


def _mlp_kernel(x_ref, w1_ref, b1_ref, w2_ref, b2_ref, w3_ref, b3_ref, o_ref):
    # Three MXU matmuls with f32 accumulation; bias adds and ReLUs stay in f32
    # on the VPU.  Dot operands are cast to the weight dtype so a bf16 weight
    # set hits the native bf16 MXU path on v6e/v7x; with f32 weights the casts
    # are no-ops.
    w_dtype = w1_ref.dtype
    h1 = jnp.dot(x_ref[...].astype(w_dtype), w1_ref[...],
                 preferred_element_type=jnp.float32) + b1_ref[...]
    h1 = jnp.maximum(h1, 0.0)
    h2 = jnp.dot(h1.astype(w_dtype), w2_ref[...],
                 preferred_element_type=jnp.float32) + b2_ref[...]
    h2 = jnp.maximum(h2, 0.0)
    o_ref[...] = (jnp.dot(h2.astype(w_dtype), w3_ref[...],
                          preferred_element_type=jnp.float32)
                  + b3_ref[...]).astype(o_ref.dtype)


def prepare_dqn_params(params, compute_dtype=jnp.float32):
    """Lay out weights/biases ONCE (hoisted out of the per-call forward).

    Only the hidden axis is zero-padded to a multiple of 128 lanes; the input
    and output feature axes keep their natural sizes so the per-call state /
    q-value HBM traffic is not inflated.  compute_dtype=jnp.bfloat16 is
    recommended on v6e/v7x (halves weight DMA, native bf16 MXU); keep float32
    when tight parity with an f32 reference is required (e.g. v5e).
    """
    (w1, b1), (w2, b2), (w3, b3) = params["fc0"], params["fc1"], params["fc2"]
    in_dim, hid = w1.shape
    out_dim = w3.shape[1]
    hid_p = _round_up(max(hid, 1), LANE)

    return dict(
        w1=_pad2d(w1.astype(compute_dtype), in_dim, hid_p),     # [in_dim, hid_p]
        b1=_pad2d(b1.reshape(1, -1).astype(jnp.float32), 1, hid_p),
        w2=_pad2d(w2.astype(compute_dtype), hid_p, hid_p),      # [hid_p, hid_p]
        b2=_pad2d(b2.reshape(1, -1).astype(jnp.float32), 1, hid_p),
        w3=_pad2d(w3.astype(compute_dtype), hid_p, out_dim),    # [hid_p, out_dim]
        b3=b3.reshape(1, -1).astype(jnp.float32),                # [1, out_dim]
    )


@functools.partial(jax.jit, static_argnames=("tile_b",))
def _forward_impl(state, w1, b1, w2, b2, w3, b3, *, tile_b):
    B, in_dim = state.shape
    hid_p = w2.shape[0]
    out_dim = w3.shape[1]
    grid = (pl.cdiv(B, tile_b),)

    return pl.pallas_call(
        _mlp_kernel,
        out_shape=jax.ShapeDtypeStruct((B, out_dim), jnp.float32),
        grid_spec=pltpu.PrefetchScalarGridSpec(
            num_scalar_prefetch=0,
            grid=grid,
            in_specs=[
                # State tile: feature axis left at its natural width (full
                # last dim is a legal block shape) -> no pad/slice HLOs and no
                # 32x-inflated x DMA.
                pl.BlockSpec((tile_b, in_dim), lambda i: (i, 0)),
                # Weights / biases fully resident; constant index_map means
                # Pallas only fetches them once per call.
                pl.BlockSpec((in_dim, hid_p), lambda i: (0, 0)),   # W1
                pl.BlockSpec((1, hid_p), lambda i: (0, 0)),        # b1
                pl.BlockSpec((hid_p, hid_p), lambda i: (0, 0)),    # W2
                pl.BlockSpec((1, hid_p), lambda i: (0, 0)),        # b2
                pl.BlockSpec((hid_p, out_dim), lambda i: (0, 0)),  # W3
                pl.BlockSpec((1, out_dim), lambda i: (0, 0)),      # b3
            ],
            out_specs=pl.BlockSpec((tile_b, out_dim), lambda i: (i, 0)),
        ),
        compiler_params=pltpu.CompilerParams(
            # Batch tiles are independent -> shard across TensorCores on v7x.
            dimension_semantics=("parallel",),
        ),
    )(state, w1, b1, w2, b2, w3, b3)


@functools.lru_cache(maxsize=1)
def _tpu_generation():
    try:
        kind = jax.devices()[0].device_kind.lower()
    except Exception:
        return 6
    if "7" in kind:
        return 7
    if "6" in kind:
        return 6
    if "5" in kind:
        return 5
    return 6


def _select_tile_b(B, gen):
    """Generation-aware batch-tile policy.

    Note: tile_b (and B, via the state shape) is a static jit argument, so the
    number of compiled variants is bounded by the distinct batch sizes used by
    the caller; the values returned here come from {B} plus a tiny fixed set.
    """
    if gen >= 7:
        # 2 TensorCores: for large B use exactly-2 fat steps (~B/2 rows, up to
        # 512) so both cores get a full-height 256x256 MXU tile.
        if B <= 256:
            return B
        if B <= 1024:
            return _round_up(pl.cdiv(B, 2), SUBLANE)
        return 512
    # Single-TensorCore parts (v5e/v6e): one grid step for anything moderate
    # (whole problem is far below scoped VMEM); tile only very large batches
    # (256-row tiles on v6e's 256x256 MXU, 128-row tiles on v5e).
    if B <= 1024:
        return B
    return 256 if gen >= 6 else 128


def dqn_forward(state, prepared, tile_b=None):
    """state: [B, input_dim] float32.  prepared: output of prepare_dqn_params."""
    B = state.shape[0]
    if tile_b is None:
        tile_b = _select_tile_b(B, _tpu_generation())
    tile_b = int(min(tile_b, B))
    if tile_b < B:
        # Tiled path: second-minor block dim must be a multiple of 8.
        tile_b = (tile_b // SUBLANE) * SUBLANE
        if tile_b == 0:
            tile_b = B
    return _forward_impl(state, prepared["w1"], prepared["b1"], prepared["w2"],
                         prepared["b2"], prepared["w3"], prepared["b3"],
                         tile_b=tile_b)


def init_dqn_params(key, input_dim, output_dim, nn_dim=3):
    """Deterministic synthetic init matching nn.Linear shapes (stored [in, out])."""
    ks = jax.random.split(key, 6)

    def linear(kw, kb, fan_in, fan_out):
        bound = 1.0 / jnp.sqrt(jnp.float32(fan_in))
        w = jax.random.uniform(kw, (fan_in, fan_out), jnp.float32, -bound, bound)
        b = jax.random.uniform(kb, (fan_out,), jnp.float32, -bound, bound)
        return w, b

    return {
        "fc0": linear(ks[0], ks[1], input_dim, nn_dim),
        "fc1": linear(ks[2], ks[3], nn_dim, nn_dim),
        "fc2": linear(ks[4], ks[5], nn_dim, output_dim),
    }


def _reference(state, params):
    # float64 numpy reference: removes any XLA matmul-precision ambiguity.
    x = np.asarray(state, dtype=np.float64)
    for name, act in (("fc0", True), ("fc1", True), ("fc2", False)):
        w, b = params[name]
        x = x @ np.asarray(w, np.float64) + np.asarray(b, np.float64)
        if act:
            x = np.maximum(x, 0.0)
    return x


if __name__ == "__main__":
    key = jax.random.PRNGKey(0)
    k_params, k_state, k_state2 = jax.random.split(key, 3)

    # Module config: input_dim=(4,), output_dim=5, default nn_dim=3; batch=2.
    input_dim, output_dim, nn_dim = 4, 5, 3
    batch = 2

    params = init_dqn_params(k_params, input_dim, output_dim, nn_dim)

    # f32 compute path (parity with the reference).
    prepared_f32 = prepare_dqn_params(params, compute_dtype=jnp.float32)

    # Tiny configured problem: single-block path, no pad / slice around the call.
    state = jax.random.normal(k_state, (batch, input_dim), jnp.float32)
    qvals = dqn_forward(state, prepared_f32)
    jax.block_until_ready(qvals)
    ref = _reference(state, params)
    assert qvals.shape == (batch, output_dim)
    assert np.allclose(np.asarray(qvals), ref, atol=1e-4, rtol=1e-4)

    # Larger, non-multiple-of-8 batch with the automatic tile policy.
    big_batch = 300
    state_big = jax.random.normal(k_state2, (big_batch, input_dim), jnp.float32)
    qvals_big = dqn_forward(state_big, prepared_f32)
    jax.block_until_ready(qvals_big)
    ref_big = _reference(state_big, params)
    assert qvals_big.shape == (big_batch, output_dim)
    assert np.allclose(np.asarray(qvals_big), ref_big, atol=1e-4, rtol=1e-4)

    # Force the multi-step grid path (128-row tiles + ragged final tile).
    qvals_tiled = dqn_forward(state_big, prepared_f32, tile_b=128)
    jax.block_until_ready(qvals_tiled)
    assert np.allclose(np.asarray(qvals_tiled), ref_big, atol=1e-4, rtol=1e-4)

    # bf16 weights (recommended on v6e/v7x): halves weight DMA, native bf16 MXU.
    prepared_bf16 = prepare_dqn_params(params, compute_dtype=jnp.bfloat16)
    qvals_bf16 = dqn_forward(state_big, prepared_bf16)
    jax.block_until_ready(qvals_bf16)
    assert np.allclose(np.asarray(qvals_bf16), ref_big, atol=5e-2, rtol=5e-2)

    print("KERNEL_OK")
</pallas_src>

<mosaic_0001>
module attributes {stable_mosaic.version = 11 : i64} {
  func.func @_mlp_kernel(%arg0: i32, %arg1: memref<2x4xf32, #tpu.memory_space<vmem>>, %arg2: memref<4x128xf32, #tpu.memory_space<vmem>>, %arg3: memref<1x128xf32, #tpu.memory_space<vmem>>, %arg4: memref<128x128xf32, #tpu.memory_space<vmem>>, %arg5: memref<1x128xf32, #tpu.memory_space<vmem>>, %arg6: memref<128x5xf32, #tpu.memory_space<vmem>>, %arg7: memref<1x5xf32, #tpu.memory_space<vmem>>, %arg8: memref<2x5xf32, #tpu.memory_space<vmem>>) attributes {dimension_semantics = [#tpu.dimension_semantics<parallel>], iteration_bounds = array<i64: 1>, scalar_prefetch = 0 : i64, scratch_operands = 0 : i64, tpu.core_type = #tpu.core_type<tc>, window_params = [{transform_indices = @transform_0, window_bounds = array<i64: 2, 4>}, {pipeline_mode = #tpu.pipeline_mode<synchronous>, transform_indices = @transform_1, window_bounds = array<i64: 4, 128>}, {pipeline_mode = #tpu.pipeline_mode<synchronous>, transform_indices = @transform_2, window_bounds = array<i64: 1, 128>}, {pipeline_mode = #tpu.pipeline_mode<synchronous>, transform_indices = @transform_3, window_bounds = array<i64: 128, 128>}, {pipeline_mode = #tpu.pipeline_mode<synchronous>, transform_indices = @transform_4, window_bounds = array<i64: 1, 128>}, {pipeline_mode = #tpu.pipeline_mode<synchronous>, transform_indices = @transform_5, window_bounds = array<i64: 128, 5>}, {pipeline_mode = #tpu.pipeline_mode<synchronous>, transform_indices = @transform_6, window_bounds = array<i64: 1, 5>}, {transform_indices = @transform_7, window_bounds = array<i64: 2, 5>}]} {
    %c0 = arith.constant 0 : index
    %c0_0 = arith.constant 0 : index
    %0 = vector.load %arg1[%c0, %c0_0] : memref<2x4xf32, #tpu.memory_space<vmem>>, vector<2x4xf32>
    %c0_1 = arith.constant 0 : index
    %c0_2 = arith.constant 0 : index
    %1 = vector.load %arg2[%c0_1, %c0_2] : memref<4x128xf32, #tpu.memory_space<vmem>>, vector<4x128xf32>
    %cst = arith.constant dense<0.000000e+00> : vector<2x128xf32>
    %2 = tpu.matmul %0, %1, %cst {dimension_numbers = #tpu.dot_dimension_numbers<[1], [0], [0], [1], [0, 0, 1, 1], [], []>} : vector<2x4xf32>, vector<4x128xf32>, vector<2x128xf32> -> vector<2x128xf32>
    %c0_3 = arith.constant 0 : index
    %c0_4 = arith.constant 0 : index
    %3 = vector.load %arg3[%c0_3, %c0_4] : memref<1x128xf32, #tpu.memory_space<vmem>>, vector<1x128xf32>
    %4 = vector.broadcast %3 : vector<1x128xf32> to vector<2x128xf32>
    %5 = arith.addf %2, %4 : vector<2x128xf32>
    %cst_5 = arith.constant 0.000000e+00 : f32
    %6 = vector.broadcast %cst_5 : f32 to vector<2x128xf32>
    %7 = arith.maximumf %5, %6 : vector<2x128xf32>
    %c0_6 = arith.constant 0 : index
    %c0_7 = arith.constant 0 : index
    %8 = vector.load %arg4[%c0_6, %c0_7] : memref<128x128xf32, #tpu.memory_space<vmem>>, vector<128x128xf32>
    %cst_8 = arith.constant dense<0.000000e+00> : vector<2x128xf32>
    %9 = tpu.matmul %7, %8, %cst_8 {dimension_numbers = #tpu.dot_dimension_numbers<[1], [0], [0], [1], [0, 0, 1, 1], [], []>} : vector<2x128xf32>, vector<128x128xf32>, vector<2x128xf32> -> vector<2x128xf32>
    %c0_9 = arith.constant 0 : index
    %c0_10 = arith.constant 0 : index
    %10 = vector.load %arg5[%c0_9, %c0_10] : memref<1x128xf32, #tpu.memory_space<vmem>>, vector<1x128xf32>
    %11 = vector.broadcast %10 : vector<1x128xf32> to vector<2x128xf32>
    %12 = arith.addf %9, %11 : vector<2x128xf32>
    %cst_11 = arith.constant 0.000000e+00 : f32
    %13 = vector.broadcast %cst_11 : f32 to vector<2x128xf32>
    %14 = arith.maximumf %12, %13 : vector<2x128xf32>
    %c0_12 = arith.constant 0 : index
    %c0_13 = arith.constant 0 : index
    %15 = vector.load %arg6[%c0_12, %c0_13] : memref<128x5xf32, #tpu.memory_space<vmem>>, vector<128x5xf32>
    %cst_14 = arith.constant dense<0.000000e+00> : vector<2x5xf32>
    %16 = tpu.matmul %14, %15, %cst_14 {dimension_numbers = #tpu.dot_dimension_numbers<[1], [0], [0], [1], [0, 0, 1, 1], [], []>} : vector<2x128xf32>, vector<128x5xf32>, vector<2x5xf32> -> vector<2x5xf32>
    %c0_15 = arith.constant 0 : index
    %c0_16 = arith.constant 0 : index
    %17 = vector.load %arg7[%c0_15, %c0_16] : memref<1x5xf32, #tpu.memory_space<vmem>>, vector<1x5xf32>
    %18 = vector.broadcast %17 : vector<1x5xf32> to vector<2x5xf32>
    %19 = arith.addf %16, %18 : vector<2x5xf32>
    %c0_17 = arith.constant 0 : index
    %c0_18 = arith.constant 0 : index
    %20 = vector.load %arg8[%c0_17, %c0_18] : memref<2x5xf32, #tpu.memory_space<vmem>>, vector<2x5xf32>
    tpu.vector_store %arg8[%c0_17, %c0_18], %19 {strides = array<i32>} : memref<2x5xf32, #tpu.memory_space<vmem>>, vector<2x5xf32>,
    return
  }
  func.func @transform_0(%arg0: i32) -> (i32, i32) {
    %c0_i32 = arith.constant 0 : i32
    %c0_i32_0 = arith.constant 0 : i32
    return %arg0, %c0_i32 : i32, i32
  }
  func.func @transform_1(%arg0: i32) -> (i32, i32) {
    %c0_i32 = arith.constant 0 : i32
    %c0_i32_0 = arith.constant 0 : i32
    %c0_i32_1 = arith.constant 0 : i32
    return %c0_i32, %c0_i32_0 : i32, i32
  }
  func.func @transform_2(%arg0: i32) -> (i32, i32) {
    %c0_i32 = arith.constant 0 : i32
    %c0_i32_0 = arith.constant 0 : i32
    %c0_i32_1 = arith.constant 0 : i32
    return %c0_i32, %c0_i32_0 : i32, i32
  }
  func.func @transform_3(%arg0: i32) -> (i32, i32) {
    %c0_i32 = arith.constant 0 : i32
    %c0_i32_0 = arith.constant 0 : i32
    %c0_i32_1 = arith.constant 0 : i32
    return %c0_i32, %c0_i32_0 : i32, i32
  }
  func.func @transform_4(%arg0: i32) -> (i32, i32) {
    %c0_i32 = arith.constant 0 : i32
    %c0_i32_0 = arith.constant 0 : i32
    %c0_i32_1 = arith.constant 0 : i32
    return %c0_i32, %c0_i32_0 : i32, i32
  }
  func.func @transform_5(%arg0: i32) -> (i32, i32) {
    %c0_i32 = arith.constant 0 : i32
    %c0_i32_0 = arith.constant 0 : i32
    %c0_i32_1 = arith.constant 0 : i32
    return %c0_i32, %c0_i32_0 : i32, i32
  }
  func.func @transform_6(%arg0: i32) -> (i32, i32) {
    %c0_i32 = arith.constant 0 : i32
    %c0_i32_0 = arith.constant 0 : i32
    %c0_i32_1 = arith.constant 0 : i32
    return %c0_i32, %c0_i32_0 : i32, i32
  }
  func.func @transform_7(%arg0: i32) -> (i32, i32) {
    %c0_i32 = arith.constant 0 : i32
    %c0_i32_0 = arith.constant 0 : i32
    return %arg0, %c0_i32 : i32, i32
  }
}

</mosaic_0001>

<bundles_post_ra>
// kernel: _forward_impl.1
= control target key start
LH: loop header
LB: loop body
LE: loop exit
PB: predicated region body
PF: predicated region fallthrough
CT: control target
= control target key end

     0   :  { %vm40_vm0 = vcmask 1043456   ;;  %vm36_vm1 = vcmask 31744   ;;  %v459_v1 = vmov 0.0   ;;  %vm460_vm2 = vmmov 0   ;;  %s655_s0 = inlined_call_operand.vmem [shape: f32[2,4], index: 0, kind: input, shape index: {}]   ;;  %s656_s1 = inlined_call_operand.vmem [shape: f32[4,128], index: 1, kind: input, shape index: {}]   ;;  %s657_s2 = inlined_call_operand.vmem [shape: f32[1,128], index: 2, kind: input, shape index: {}]   ;;  %s658_s3 = inlined_call_operand.vmem [shape: f32[128,128], index: 3, kind: input, shape index: {}]   ;;  %s659_s4 = inlined_call_operand.vmem [shape: f32[1,128], index: 4, kind: input, shape index: {}]   ;;  %s660_s5 = inlined_call_operand.vmem [shape: f32[128,5], index: 5, kind: input, shape index: {}]   ;;  %s661_s6 = inlined_call_operand.vmem [shape: f32[1,5], index: 6, kind: input, shape index: {}]   ;;  %s662_s7 = inlined_call_operand.hbm [shape: f32[2,5], index: 7, kind: output, shape index: {}]  }
   0x1   :  { %v28_v0 = vld [vmem:[%s656_s1] sm:$0xf]  ;;  %359 = vmatprep.subr.mxu0 %v459_v1  ;;  %361 = vmatprep.mubr.msk.f32.mxu0 %vm460_vm2, %v459_v1  ;;  %v130_v3 = vld [vmem:[%s658_s3 + $0x78] sm:$0xff]  ;;  %v129_v4 = vld [vmem:[%s658_s3 + $0x70] sm:$0xff] }
   0x2   :  { %v27_v2 = vld [vmem:[%s655_s0] sm:$0x3]  ;;  %360 = vmatpush3.msk.msra.mxu0 %vm40_vm0, %v28_v0  ;;  %364 = vmatprep.subr.mxu1 %v459_v1  ;;  %v128_v5 = vld [vmem:[%s658_s3 + $0x68] sm:$0xff] }
   0x3   :  { %362 = vmatmul.mubr.msk.f32.vlgmr.msra.gmra.mxu0 %vm36_vm1, %v27_v2  ;;  %365 = vmatpush3.msra.mxu1 %v130_v3  ;;  %v127_v6 = vld [vmem:[%s658_s3 + $0x60] sm:$0xff] }
   0x4   :  { %366 = vmatprep.subr.mxu1 %v459_v1  ;;  %396 = vmatprep.mubr.msk.f32.mxu1 %vm460_vm2, %v459_v1 }
   0x5   :  { %367 = vmatpush3.msra.mxu1 %v129_v4  ;;  %399 = vmatprep.subr.mxu0 %v459_v1 }
   0x6   :  { %368 = vmatprep.subr.mxu1 %v459_v1  ;;  %431 = vmatprep.mubr.msk.f32.mxu0 %vm460_vm2, %v459_v1 }
   0x7   :  { %12 = vsyncpa [#allocation3], 0  ;;  %369 = vmatpush3.msra.mxu1 %v128_v5  ;;  %v126_v7 = vld [vmem:[%s658_s3 + $0x58] sm:$0xff]  ;;  %v125_v8 = vld [vmem:[%s658_s3 + $0x50] sm:$0xff]  ;;  %s461_s20 = smov [#allocation2]   ;;  %vm302_vm3 = vcmask 33792  }
   0x8   :  { %370 = vmatprep.subr.mxu1 %v459_v1  ;;  %v124_v9 = vld [vmem:[%s658_s3 + $0x48] sm:$0xff]  ;;  %v123_v10 = vld [vmem:[%s658_s3 + $0x40] sm:$0xff]  ;;  %v122_v11 = vld [vmem:[%s658_s3 + $0x38] sm:$0xff]  ;;  %s310_s21 = sshll.u32 %s461_s20, 4  ;;  %s311_s21 = int_to_ptr.vmem [resolvable:$true] %s310_s21 }
   0x9   :  { %371 = vmatpush3.msra.mxu1 %v127_v6  ;;  %v121_v12 = vld [vmem:[%s658_s3 + $0x30] sm:$0xff]  ;;  %v120_v13 = vld [vmem:[%s658_s3 + $0x28] sm:$0xff]  ;;  %v119_v14 = vld [vmem:[%s658_s3 + $0x20] sm:$0xff]  ;;  %p442_p1 = scmp.lt.s32.totalorder %s311_s21, %s311_s21 }
   0xa   :  { %372 = vmatprep.subr.mxu1 %v459_v1  ;;  %v118_v15 = vld [vmem:[%s658_s3 + $0x18] sm:$0xff]  ;;  %v117_v16 = vld [vmem:[%s658_s3 + $0x10] sm:$0xff]  ;;  %v116_v17 = vld [vmem:[%s658_s3 + $0x8] sm:$0xff] }
   0xb   :  { %373 = vmatpush3.msra.mxu1 %v126_v7  ;;  %v115_v18 = vld [vmem:[%s658_s3] sm:$0xff]  ;;  %v224_v19 = vld [vmem:[%s660_s5 + $0x78] sm:$0xff]  ;;  %v223_v20 = vld [vmem:[%s660_s5 + $0x70] sm:$0xff] }
   0xc   :  { %374 = vmatprep.subr.mxu1 %v459_v1  ;;  %400 = vmatpush3.msra.mxu0 %v224_v19  ;;  %v222_v21 = vld [vmem:[%s660_s5 + $0x68] sm:$0xff]  ;;  %v221_v22 = vld [vmem:[%s660_s5 + $0x60] sm:$0xff]  ;;  %v220_v23 = vld [vmem:[%s660_s5 + $0x58] sm:$0xff] }
   0xd   :  { %375 = vmatpush3.msra.mxu1 %v125_v8  ;;  %401 = vmatprep.subr.mxu0 %v459_v1  ;;  %v219_v24 = vld [vmem:[%s660_s5 + $0x50] sm:$0xff]  ;;  %v218_v25 = vld [vmem:[%s660_s5 + $0x48] sm:$0xff]  ;;  %v217_v26 = vld [vmem:[%s660_s5 + $0x40] sm:$0xff] }
   0xe   :  { %376 = vmatprep.subr.mxu1 %v459_v1  ;;  %402 = vmatpush3.msra.mxu0 %v223_v20  ;;  %v216_v27 = vld [vmem:[%s660_s5 + $0x38] sm:$0xff]  ;;  %v215_v28 = vld [vmem:[%s660_s5 + $0x30] sm:$0xff]  ;;  %v214_v29 = vld [vmem:[%s660_s5 + $0x28] sm:$0xff] }
   0xf   :  { %377 = vmatpush3.msra.mxu1 %v124_v9  ;;  %403 = vmatprep.subr.mxu0 %v459_v1  ;;  %v213_v30 = vld [vmem:[%s660_s5 + $0x20] sm:$0xff]  ;;  %v212_v31 = vld [vmem:[%s660_s5 + $0x18] sm:$0xff]  ;;  %v211_v37 = vld [vmem:[%s660_s5 + $0x10] sm:$0xff] }
  0x10   :  { %378 = vmatprep.subr.mxu1 %v459_v1  ;;  %404 = vmatpush3.msra.mxu0 %v222_v21  ;;  %v318_v32 = vld [vmem:[%s657_s2] ss:$0 sm:$0xff]  ;;  %v210_v38 = vld [vmem:[%s660_s5 + $0x8] sm:$0xff] }
  0x11   :  { %379 = vmatpush3.msra.mxu1 %v123_v10  ;;  %405 = vmatprep.subr.mxu0 %v459_v1  ;;  %v209_v39 = vld [vmem:[%s660_s5] sm:$0xff]  ;;  %s437_s5 = scalar_lea.vmem %s311_s21, 32 }
  0x12   :  { %380 = vmatprep.subr.mxu1 %v459_v1  ;;  %406 = vmatpush3.msra.mxu0 %v221_v22  ;;  %v321_v40 = vld [vmem:[%s659_s4] ss:$0 sm:$0xff]  ;;  %p438_p0 = scmp.ne.s32.totalorder %s311_s21, %s437_s5  ;;  %p443_p2 = scmp.lt.s32.totalorder %s437_s5, %s437_s5 }
  0x13   :  { %381 = vmatpush3.msra.mxu1 %v122_v11  ;;  %407 = vmatprep.subr.mxu0 %v459_v1  ;;  %v322_v45 = vld [vmem:[%s661_s6] ss:$0 sm:$0xff] }
  0x14   :  { %382 = vmatprep.subr.mxu1 %v459_v1  ;;  %408 = vmatpush3.msra.mxu0 %v220_v23  ;;  %p444_p3 = por %p443_p2, %p442_p1 }
  0x15   :  { %383 = vmatpush3.msra.mxu1 %v121_v12  ;;  %409 = vmatprep.subr.mxu0 %v459_v1 }
  0x16   :  { %384 = vmatprep.subr.mxu1 %v459_v1  ;;  %410 = vmatpush3.msra.mxu0 %v219_v24  ;;  %p445_p4 = pnand %p444_p3, %p438_p0 }
  0x17   :  { %385 = vmatpush3.msra.mxu1 %v120_v13  ;;  %411 = vmatprep.subr.mxu0 %v459_v1 }
  0x18   :  { %386 = vmatprep.subr.mxu1 %v459_v1  ;;  %412 = vmatpush3.msra.mxu0 %v218_v25 }
  0x19   :  { %387 = vmatpush3.msra.mxu1 %v119_v14  ;;  %413 = vmatprep.subr.mxu0 %v459_v1 }
  0x1a   :  { %388 = vmatprep.subr.mxu1 %v459_v1  ;;  %414 = vmatpush3.msra.mxu0 %v217_v26 }
  0x1b   :  { %389 = vmatpush3.msra.mxu1 %v118_v15  ;;  %415 = vmatprep.subr.mxu0 %v459_v1 }
  0x1c   :  { %390 = vmatprep.subr.mxu1 %v459_v1  ;;  %416 = vmatpush3.msra.mxu0 %v216_v27 }
  0x1d   :  { %391 = vmatpush3.msra.mxu1 %v117_v16  ;;  %417 = vmatprep.subr.mxu0 %v459_v1 }
  0x1e   :  { %392 = vmatprep.subr.mxu1 %v459_v1  ;;  %418 = vmatpush3.msra.mxu0 %v215_v28 }
  0x1f   :  { %393 = vmatpush3.msra.mxu1 %v116_v17  ;;  %419 = vmatprep.subr.mxu0 %v459_v1 }
  0x20   :  { %394 = vmatprep.subr.mxu1 %v459_v1  ;;  %420 = vmatpush3.msra.mxu0 %v214_v29 }
  0x21   :  { %395 = vmatpush3.msra.mxu1 %v115_v18  ;;  %421 = vmatprep.subr.mxu0 %v459_v1 }
  0x22   :  { %422 = vmatpush3.msra.mxu0 %v213_v30 }
  0x23   :  { %423 = vmatprep.subr.mxu0 %v459_v1 }
  0x24   :  { %424 = vmatpush3.msra.mxu0 %v212_v31 }
  0x25   :  { %425 = vmatprep.subr.mxu0 %v459_v1 }
  0x26   :  { %426 = vmatpush3.msra.mxu0 %v211_v37 }
  0x27   :  { %427 = vmatprep.subr.mxu0 %v459_v1 }
  0x28   :  { %428 = vmatpush3.msra.mxu0 %v210_v38 }
  0x29   :  { %429 = vmatprep.subr.mxu0 %v459_v1 }
  0x2a   :  { %430 = vmatpush3.msra.mxu0 %v209_v39 }
  0xc3   :  { %v110_v33 = vpop.f32.mrf.mxu0 }
  0xc4   :  { %v111_v34 = vadd.f32 %v318_v32, %v110_v33 }
  0xc5   :  { %v363_v35 = vpop.f32.mrf.mxu0 }
  0xc6   :  { %v114_v36 = vmax.f32 %v111_v34, 0.0 }
  0xc8   :  { %397 = vmatmul.mubr.f32.vlgmr.msra.gmra.mxu1 %v114_v36 }
 0x188   :  { %v204_v41 = vpop.f32.mrf.mxu1 }
 0x189   :  { %v205_v42 = vadd.f32 %v321_v40, %v204_v41 }
 0x18a   :  { %v398_v43 = vpop.f32.mrf.mxu1 }
 0x18b   :  { %v208_v44 = vmax.f32 %v205_v42, 0.0 }
 0x18d   :  { %432 = vmatmul.mubr.f32.vlgmr.msra.gmra.mxu0 %v208_v44 }
 0x24d   :  { %v298_v46 = vpop.f32.mrf.mxu0 }
 0x24e   :  { %v299_v47 = vadd.f32 %v322_v45, %v298_v46 }
 0x24f   :  { %v433_v48 = vpop.f32.mrf.mxu0 }
 0x250   :  { %303 = vst.msk [vmem:[#allocation2] sm:$0x3] %vm302_vm3, %v299_v47 }
 0x251   :  { %448 = shalt.err (!%p445_p4)
}
 0x252   :  { %313 = dma.vmem_to_hbm [thread:$0]  %s311_s21, 32, %s662_s7, [#allocation3]  }
 0x253   :  { %457 = dma.done.wait [#allocation3], 32  }
 0x254   :  { %458 = vsyncadd [#allocation3], 4294967264 }
 0x255   :  { %317 = vsyncpa [#allocation3], 1 }

</bundles_post_ra>
